<compile_context>
chip_gen: v7x
topology: tpu7x:2x2x1
jax: 0.10.0
libtpu: 0.0.40
codegen_flags: <defaults>
</compile_context>

<pallas_src>
import functools
import math

import jax
import jax.numpy as jnp
from jax import lax
from jax.experimental import pallas as pl
from jax.experimental.pallas import tpu as pltpu


# ----------------------------------------------------------------------------
# Parameter construction (deterministic, mirrors the PyTorch __init__)
# ----------------------------------------------------------------------------
def make_rte_params(n_hid: int, max_len: int = 240):
    # Sinusoid embedding table, exactly as in the PyTorch module (float32).
    position = jnp.arange(0.0, max_len, dtype=jnp.float32)[:, None]        # [max_len, 1]
    # NOTE: operator precedence AND float32 overflow reproduced verbatim from
    # the PyTorch code (torch also evaluates 10000**arange in float32, so the
    # upper dims overflow to inf -> div_term becomes exactly 0 there too):
    #   div_term = 1 / ((10000 ** arange(0, 2*n_hid, 2)) / n_hid / 2)
    div_term = 1.0 / (
        (10000.0 ** jnp.arange(0.0, n_hid * 2, 2.0, dtype=jnp.float32)) / n_hid / 2.0
    )                                                                        # [n_hid]
    ang = position * div_term                                                # [max_len, n_hid]
    emb = jnp.zeros((max_len, n_hid * 2), dtype=jnp.float32)
    emb = emb.at[:, 0::2].set(jnp.sin(ang) / math.sqrt(n_hid))
    emb = emb.at[:, 1::2].set(jnp.cos(ang) / math.sqrt(n_hid))

    # nn.Linear(n_hid * 2, n_hid): deterministic uniform init (torch default bound).
    key = jax.random.PRNGKey(42)
    kw, kb = jax.random.split(key)
    bound = 1.0 / math.sqrt(n_hid * 2)
    w = jax.random.uniform(kw, (n_hid, n_hid * 2), jnp.float32, -bound, bound)  # [H, 2H]
    b = jax.random.uniform(kb, (n_hid,), jnp.float32, -bound, bound)            # [H]
    return emb, w, b


# ----------------------------------------------------------------------------
# Pallas kernel:  out = x + table[t]   (packed lane-dense layout)
#   t_ref     : [bm, pack]          int32 token positions (pack tokens / row)
#   x_ref     : [bm, pack*H]        input rows, lane-dense
#   table_ref : [pack, 256, pack*H] per-slot lane-shifted projected table
#   o_ref     : [bm, pack*H]
# The lookup is an exact one-hot matmul on the MXU; residual add on the VPU.
# ----------------------------------------------------------------------------
def _rte_kernel(t_ref, x_ref, table_ref, o_ref, *, chunk, n_chunks):
    pack = t_ref.shape[1]
    lslot = table_ref.shape[1]

    # Lane-position iota, generated once per grid step (cheap: ~3% of the
    # per-step VALU work; a scratch hoist under pl.when(pid==0) is possible
    # but unnecessary even on v7x).
    pos = lax.broadcasted_iota(jnp.int32, (chunk, lslot), 1)                 # [chunk, 256]

    for c in range(n_chunks):                       # static, unrolled
        r0 = c * chunk
        ids = t_ref[pl.ds(r0, chunk), :]                                     # [chunk, pack]
        acc = x_ref[pl.ds(r0, chunk), :].astype(jnp.float32)                 # [chunk, lanes]
        for k in range(pack):                       # static, unrolled
            onehot = (ids[:, k:k + 1] == pos).astype(jnp.float32)            # [chunk, 256]
            acc = acc + jnp.dot(onehot, table_ref[k],
                                preferred_element_type=jnp.float32)          # MXU
        o_ref[pl.ds(r0, chunk), :] = acc.astype(o_ref.dtype)


def _round_up(a: int, m: int) -> int:
    return ((a + m - 1) // m) * m


_CHUNK = 512  # packed rows per inner compute chunk (keeps one-hot ~0.5 MB f32)


def _choose_block_rows(np_rows: int, lanes: int, itemsize: int) -> int:
    # ~1 MiB of x per grid step: big enough to amortize the ~0.35us per-step
    # overhead, small enough for modest double-buffered VMEM use everywhere.
    target = max(8, ((1 << 20) // (lanes * itemsize)) // 8 * 8)
    # Keep >=2 grid steps when there is enough work so v7x's 2 TCs both engage.
    half = _round_up(-(-np_rows // 2), 8)
    bmp = max(8, min(target, half))
    if np_rows <= bmp:
        return np_rows                      # single full block, exact extent
    if bmp > _CHUNK:
        bmp = (bmp // _CHUNK) * _CHUNK      # multiple of the inner chunk
    return bmp


def rel_temporal_encoding(x, t, emb, w, b, *, donate_x: bool = False):
    """JAX wrapper reproducing RelTemporalEncoding.forward (eval mode)."""
    orig_shape = x.shape
    h = x.shape[-1]
    max_len = emb.shape[0]

    # Fold Embedding -> Dropout(eval: identity) -> Linear into one small table
    # kept in float32 (accumulation is f32; only the final add casts to x.dtype).
    # TODO(synk): training-mode dropout on the embedding cannot be folded here.
    table = jnp.dot(emb, w.T, precision=lax.Precision.HIGHEST) + b[None, :]  # [max_len, H] f32

    xf = x.reshape(-1, h)
    tf = t.reshape(-1).astype(jnp.int32)
    n = xf.shape[0]

    # Adaptive lane packing: largest power-of-two pack (<= 128//H) dividing N,
    # so no padding / extra HBM pass is ever needed.
    full_pack = 128 // h if (h <= 128 and 128 % h == 0) else 1
    pack = 1
    p = full_pack
    while p >= 1:
        if n % p == 0:
            pack = p
            break
        p //= 2
    lanes = pack * h
    np_rows = n // pack

    xp = xf.reshape(np_rows, lanes)          # free: contiguous row-major view
    tp = tf.reshape(np_rows, pack)

    # Per-slot lane-shifted (block-diagonal) packed table: slot k holds the
    # projected table in lanes [k*H, (k+1)*H); rows max_len..lslot-1 are zero.
    lslot = _round_up(max_len, 128)
    table_pad = jnp.zeros((lslot, h), jnp.float32).at[:max_len, :].set(table)
    tab = jnp.zeros((pack, lslot, lanes), jnp.float32)
    for k in range(pack):
        tab = tab.at[k, :, k * h:(k + 1) * h].set(table_pad)

    bmp = _choose_block_rows(np_rows, lanes, x.dtype.itemsize)
    chunk = min(_CHUNK, bmp)
    n_chunks = bmp // chunk
    # Partial last block: Pallas drops OOB writes; OOB t/x reads are harmless.
    grid = (pl.cdiv(np_rows, bmp),)

    kernel = functools.partial(_rte_kernel, chunk=chunk, n_chunks=n_chunks)

    out = pl.pallas_call(
        kernel,
        out_shape=jax.ShapeDtypeStruct((np_rows, lanes), x.dtype),
        grid=grid,
        in_specs=[
            pl.BlockSpec((bmp, pack), lambda i: (i, 0)),               # t (packed ids)
            pl.BlockSpec((bmp, lanes), lambda i: (i, 0)),              # x (lane-dense)
            pl.BlockSpec((pack, lslot, lanes), lambda i: (0, 0, 0)),   # table (resident)
        ],
        out_specs=pl.BlockSpec((bmp, lanes), lambda i: (i, 0)),
        compiler_params=pltpu.CompilerParams(
            dimension_semantics=("parallel",),        # shard rows across TCs (v7x)
            vmem_limit_bytes=32 * 1024 * 1024,        # headroom over v5e's 16 MiB default
        ),
        # Opt-in only: aliasing forces XLA to donate/copy x, so keep it off by default.
        input_output_aliases=({1: 0} if donate_x else {}),
    )(tp, xp, tab)

    return out.reshape(orig_shape)


# ----------------------------------------------------------------------------
# Demo / self-check
# ----------------------------------------------------------------------------
def _reference(x, t, emb, w, b):
    h = x.shape[-1]
    proj = jnp.dot(jnp.take(emb, t.reshape(-1), axis=0), w.T,
                   precision=lax.Precision.HIGHEST) + b
    return x + proj.reshape(*t.shape, h).astype(x.dtype)


if __name__ == "__main__":
    n_hid = 32
    max_len = 240
    emb, w, b = make_rte_params(n_hid, max_len)

    key = jax.random.PRNGKey(0)

    # Case 1: small demo shape (B=2, S=8, H=32) -- single grid step, pack=4.
    k1, k2, k3, k4 = jax.random.split(key, 4)
    x1 = jax.random.normal(k1, (2, 8, n_hid), dtype=jnp.float32)
    t1 = jax.random.randint(k2, (2, 8), 0, max_len)
    out1 = jax.block_until_ready(rel_temporal_encoding(x1, t1, emb, w, b))
    ref1 = _reference(x1, t1, emb, w, b)
    assert out1.shape == x1.shape and out1.dtype == x1.dtype
    assert jnp.allclose(out1, ref1, atol=1e-4, rtol=1e-4), "mismatch (case 1)"

    # Case 2: multi-step grid with a partial last block (B=2, S=250, H=32).
    x2 = jax.random.normal(k3, (2, 250, n_hid), dtype=jnp.float32)
    t2 = jax.random.randint(k4, (2, 250), 0, max_len)
    out2 = jax.block_until_ready(rel_temporal_encoding(x2, t2, emb, w, b))
    ref2 = _reference(x2, t2, emb, w, b)
    assert out2.shape == x2.shape and out2.dtype == x2.dtype
    assert jnp.allclose(out2, ref2, atol=1e-4, rtol=1e-4), "mismatch (case 2)"

    print("KERNEL_OK")
</pallas_src>

<mosaic_0001>
module attributes {stable_mosaic.version = 11 : i64} {
  func.func @_rte_kernel(%arg0: i32, %arg1: memref<4x4xi32, #tpu.memory_space<vmem>>, %arg2: memref<4x128xf32, #tpu.memory_space<vmem>>, %arg3: memref<4x256x128xf32, #tpu.memory_space<vmem>>, %arg4: memref<4x128xf32, #tpu.memory_space<vmem>>) attributes {dimension_semantics = [#tpu.dimension_semantics<parallel>], iteration_bounds = array<i64: 1>, scalar_prefetch = 0 : i64, scratch_operands = 0 : i64, tpu.core_type = #tpu.core_type<tc>, window_params = [{transform_indices = @transform_0, window_bounds = array<i64: 4, 4>}, {transform_indices = @transform_1, window_bounds = array<i64: 4, 128>}, {pipeline_mode = #tpu.pipeline_mode<synchronous>, transform_indices = @transform_2, window_bounds = array<i64: 4, 256, 128>}, {transform_indices = @transform_3, window_bounds = array<i64: 4, 128>}]} {
    %0 = tpu.iota {dimensions = array<i32: 1>} : vector<4x256xi32>
    %c0 = arith.constant 0 : index
    %c0_0 = arith.constant 0 : index
    %1 = vector.load %arg1[%c0, %c0_0] : memref<4x4xi32, #tpu.memory_space<vmem>>, vector<4x4xi32>
    %c0_1 = arith.constant 0 : index
    %c0_2 = arith.constant 0 : index
    %2 = vector.load %arg2[%c0_1, %c0_2] : memref<4x128xf32, #tpu.memory_space<vmem>>, vector<4x128xf32>
    %3 = vector.extract_strided_slice %1 {offsets = [0, 0], sizes = [4, 1], strides = [1, 1]} : vector<4x4xi32> to vector<4x1xi32>
    %4 = vector.broadcast %3 : vector<4x1xi32> to vector<4x256xi32>
    %5 = arith.cmpi eq, %4, %0 : vector<4x256xi32>
    %6 = arith.extui %5 : vector<4x256xi1> to vector<4x256xi32>
    %7 = arith.sitofp %6 : vector<4x256xi32> to vector<4x256xf32>
    %c0_3 = arith.constant 0 : index
    %c0_4 = arith.constant 0 : index
    %c0_5 = arith.constant 0 : index
    %8 = vector.load %arg3[%c0_3, %c0_4, %c0_5] : memref<4x256x128xf32, #tpu.memory_space<vmem>>, vector<1x256x128xf32>
    %9 = vector.shape_cast %8 : vector<1x256x128xf32> to vector<256x128xf32>
    %cst = arith.constant dense<0.000000e+00> : vector<4x128xf32>
    %10 = tpu.matmul %7, %9, %cst {dimension_numbers = #tpu.dot_dimension_numbers<[1], [0], [0], [1], [0, 0, 1, 1], [], []>} : vector<4x256xf32>, vector<256x128xf32>, vector<4x128xf32> -> vector<4x128xf32>
    %11 = arith.addf %2, %10 : vector<4x128xf32>
    %12 = vector.extract_strided_slice %1 {offsets = [0, 1], sizes = [4, 1], strides = [1, 1]} : vector<4x4xi32> to vector<4x1xi32>
    %13 = vector.broadcast %12 : vector<4x1xi32> to vector<4x256xi32>
    %14 = arith.cmpi eq, %13, %0 : vector<4x256xi32>
    %15 = arith.extui %14 : vector<4x256xi1> to vector<4x256xi32>
    %16 = arith.sitofp %15 : vector<4x256xi32> to vector<4x256xf32>
    %c1 = arith.constant 1 : index
    %c0_6 = arith.constant 0 : index
    %c0_7 = arith.constant 0 : index
    %17 = vector.load %arg3[%c1, %c0_6, %c0_7] : memref<4x256x128xf32, #tpu.memory_space<vmem>>, vector<1x256x128xf32>
    %18 = vector.shape_cast %17 : vector<1x256x128xf32> to vector<256x128xf32>
    %cst_8 = arith.constant dense<0.000000e+00> : vector<4x128xf32>
    %19 = tpu.matmul %16, %18, %cst_8 {dimension_numbers = #tpu.dot_dimension_numbers<[1], [0], [0], [1], [0, 0, 1, 1], [], []>} : vector<4x256xf32>, vector<256x128xf32>, vector<4x128xf32> -> vector<4x128xf32>
    %20 = arith.addf %11, %19 : vector<4x128xf32>
    %21 = vector.extract_strided_slice %1 {offsets = [0, 2], sizes = [4, 1], strides = [1, 1]} : vector<4x4xi32> to vector<4x1xi32>
    %22 = vector.broadcast %21 : vector<4x1xi32> to vector<4x256xi32>
    %23 = arith.cmpi eq, %22, %0 : vector<4x256xi32>
    %24 = arith.extui %23 : vector<4x256xi1> to vector<4x256xi32>
    %25 = arith.sitofp %24 : vector<4x256xi32> to vector<4x256xf32>
    %c2 = arith.constant 2 : index
    %c0_9 = arith.constant 0 : index
    %c0_10 = arith.constant 0 : index
    %26 = vector.load %arg3[%c2, %c0_9, %c0_10] : memref<4x256x128xf32, #tpu.memory_space<vmem>>, vector<1x256x128xf32>
    %27 = vector.shape_cast %26 : vector<1x256x128xf32> to vector<256x128xf32>
    %cst_11 = arith.constant dense<0.000000e+00> : vector<4x128xf32>
    %28 = tpu.matmul %25, %27, %cst_11 {dimension_numbers = #tpu.dot_dimension_numbers<[1], [0], [0], [1], [0, 0, 1, 1], [], []>} : vector<4x256xf32>, vector<256x128xf32>, vector<4x128xf32> -> vector<4x128xf32>
    %29 = arith.addf %20, %28 : vector<4x128xf32>
    %30 = vector.extract_strided_slice %1 {offsets = [0, 3], sizes = [4, 1], strides = [1, 1]} : vector<4x4xi32> to vector<4x1xi32>
    %31 = vector.broadcast %30 : vector<4x1xi32> to vector<4x256xi32>
    %32 = arith.cmpi eq, %31, %0 : vector<4x256xi32>
    %33 = arith.extui %32 : vector<4x256xi1> to vector<4x256xi32>
    %34 = arith.sitofp %33 : vector<4x256xi32> to vector<4x256xf32>
    %c3 = arith.constant 3 : index
    %c0_12 = arith.constant 0 : index
    %c0_13 = arith.constant 0 : index
    %35 = vector.load %arg3[%c3, %c0_12, %c0_13] : memref<4x256x128xf32, #tpu.memory_space<vmem>>, vector<1x256x128xf32>
    %36 = vector.shape_cast %35 : vector<1x256x128xf32> to vector<256x128xf32>
    %cst_14 = arith.constant dense<0.000000e+00> : vector<4x128xf32>
    %37 = tpu.matmul %34, %36, %cst_14 {dimension_numbers = #tpu.dot_dimension_numbers<[1], [0], [0], [1], [0, 0, 1, 1], [], []>} : vector<4x256xf32>, vector<256x128xf32>, vector<4x128xf32> -> vector<4x128xf32>
    %38 = arith.addf %29, %37 : vector<4x128xf32>
    %c0_15 = arith.constant 0 : index
    %c0_16 = arith.constant 0 : index
    %39 = vector.load %arg4[%c0_15, %c0_16] : memref<4x128xf32, #tpu.memory_space<vmem>>, vector<4x128xf32>
    tpu.vector_store %arg4[%c0_15, %c0_16], %38 {strides = array<i32>} : memref<4x128xf32, #tpu.memory_space<vmem>>, vector<4x128xf32>,
    return
  }
  func.func @transform_0(%arg0: i32) -> (i32, i32) {
    %c0_i32 = arith.constant 0 : i32
    %c0_i32_0 = arith.constant 0 : i32
    return %arg0, %c0_i32 : i32, i32
  }
  func.func @transform_1(%arg0: i32) -> (i32, i32) {
    %c0_i32 = arith.constant 0 : i32
    %c0_i32_0 = arith.constant 0 : i32
    return %arg0, %c0_i32 : i32, i32
  }
  func.func @transform_2(%arg0: i32) -> (i32, i32, i32) {
    %c0_i32 = arith.constant 0 : i32
    %c0_i32_0 = arith.constant 0 : i32
    %c0_i32_1 = arith.constant 0 : i32
    %c0_i32_2 = arith.constant 0 : i32
    return %c0_i32, %c0_i32_0, %c0_i32_1 : i32, i32, i32
  }
  func.func @transform_3(%arg0: i32) -> (i32, i32) {
    %c0_i32 = arith.constant 0 : i32
    %c0_i32_0 = arith.constant 0 : i32
    return %arg0, %c0_i32 : i32, i32
  }
}

</mosaic_0001>

<bundles_post_ra>
// kernel: tpu_custom_call.1
= control target key start
LH: loop header
LB: loop body
LE: loop exit
PB: predicated region body
PF: predicated region fallthrough
CT: control target
= control target key end

     0   :  { %8 = vsyncpa [#allocation3], 0  ;;  %s1023_s0 = inlined_call_operand.hbm [shape: s32[4,4], index: 0, kind: input, shape index: {}]   ;;  %s1024_s1 = inlined_call_operand.hbm [shape: f32[4,128], index: 1, kind: input, shape index: {}]   ;;  %s1025_s2 = inlined_call_operand.hbm [shape: f32[4,256,128], index: 2, kind: input, shape index: {}]   ;;  %s1026_s3 = inlined_call_operand.hbm [shape: f32[4,128], index: 3, kind: output, shape index: {}]  }
   0x1   :  { %9 = vsyncpa [#allocation6], 0 }
   0x2   :  { %10 = vsyncpa [#allocation4], 0  ;;  %s919_s12 = smov [#allocation5]   ;;  %s920_s14 = smov [#allocation2]  }
   0x3   :  { %s27_s13 = sshll.u32 %s919_s12, 4  ;;  %s17_s15 = sshll.u32 %s920_s14, 4  ;;  %s28_s13 = int_to_ptr.vmem [resolvable:$true] %s27_s13  ;;  %s18_s15 = int_to_ptr.vmem [resolvable:$true] %s17_s15 }
   0x4   :  { %s825_s18 = scalar_lea.hbm %s1024_s1, 64 }
   0x5   :  { %p826_p0 = scmp.ne.s32.totalorder %s1024_s1, %s825_s18  ;;  %p829_p1 = scmp.lt.u32.totalorder %s825_s18, %s1024_s1 }
   0x7   :  { %p831_p2 = pnand %p829_p1, %p826_p0 }
   0x9   :  { %834 = shalt.err (!%p831_p2)
}
   0xa   :  { %s835_s23 = scalar_lea.vmem %s28_s13, 64  ;;  %p840_p4 = scmp.lt.s32.totalorder %s28_s13, %s28_s13 }
   0xb   :  { %p836_p3 = scmp.ne.s32.totalorder %s28_s13, %s835_s23  ;;  %p841_p5 = scmp.lt.s32.totalorder %s835_s23, %s835_s23 }
   0xd   :  { %p842_p6 = por %p841_p5, %p840_p4 }
   0xf   :  { %p843_p7 = pnand %p842_p6, %p836_p3 }
  0x11   :  { %846 = shalt.err (!%p843_p7)
}
  0x12   :  { %30 = dma.hbm_to_vmem [thread:$0]  %s1024_s1, 64, %s28_s13, [#allocation6]  }
  0x13   :  { %s847_s28 = scalar_lea.hbm %s1023_s0, 64 }
  0x14   :  { %p848_p8 = scmp.ne.s32.totalorder %s1023_s0, %s847_s28  ;;  %p851_p9 = scmp.lt.u32.totalorder %s847_s28, %s1023_s0 }
  0x16   :  { %p853_p10 = pnand %p851_p9, %p848_p8 }
  0x18   :  { %856 = shalt.err (!%p853_p10)
}
  0x19   :  { %s857_s6 = scalar_lea.vmem %s18_s15, 64  ;;  %p862_p12 = scmp.lt.s32.totalorder %s18_s15, %s18_s15 }
  0x1a   :  { %p858_p11 = scmp.ne.s32.totalorder %s18_s15, %s857_s6  ;;  %p863_p13 = scmp.lt.s32.totalorder %s857_s6, %s857_s6 }
  0x1c   :  { %p864_p0 = por %p863_p13, %p862_p12 }
  0x1e   :  { %p865_p1 = pnand %p864_p0, %p858_p11 }
  0x20   :  { %868 = shalt.err (!%p865_p1)
}
  0x21   :  { %20 = dma.hbm_to_vmem [thread:$0]  %s1023_s0, 64, %s18_s15, [#allocation3]  }
  0x22   :  { %s921_s8 = smov [#allocation7]   ;;  %s869_s12 = scalar_lea.hbm %s1025_s2, 16384 }
  0x23   :  { %s36_s9 = sshll.u32 %s921_s8, 4  ;;  %p870_p2 = scmp.ne.s32.totalorder %s1025_s2, %s869_s12  ;;  %s37_s9 = int_to_ptr.vmem [resolvable:$true] %s36_s9 }
  0x24   :  { %p873_p3 = scmp.lt.u32.totalorder %s869_s12, %s1025_s2 }
  0x26   :  { %p875_p4 = pnand %p873_p3, %p870_p2 }
  0x28   :  { %878 = shalt.err (!%p875_p4)
}
  0x29   :  { %s879_s18 = scalar_lea.vmem %s37_s9, 16384  ;;  %p884_p6 = scmp.lt.s32.totalorder %s37_s9, %s37_s9 }
  0x2a   :  { %p880_p5 = scmp.ne.s32.totalorder %s37_s9, %s879_s18  ;;  %p885_p7 = scmp.lt.s32.totalorder %s879_s18, %s879_s18 }
  0x2c   :  { %p886_p8 = por %p885_p7, %p884_p6 }
  0x2e   :  { %p887_p9 = pnand %p886_p8, %p880_p5 }
  0x30   :  { %890 = shalt.err (!%p887_p9)
}
  0x31   :  { %s922_s0 = smov 128   ;;  %s923_s15 = smov 8  }
  0x32   :  { %42 = dma.hbm_to_vmem [thread:$0]  %s1025_s2, 16384, %s37_s9, [#allocation6], %s922_s0, %s922_s0, %s923_s15  }
  0x33   :  { %913 = dma.done.wait [#allocation3], 64  }
  0x34   :  { %914 = vsyncadd [#allocation3], 4294967232 }
  0x35   :  { %915 = dma.done.wait [#allocation6], 16448  }
  0x36   :  { %916 = vsyncadd [#allocation6], 4294950848  ;;  %v924_v0 = vmov 0   ;;  %v925_v1 = vmov 2   ;;  %v55_v2 = vld [vmem:[#allocation2] sm:$0xf] }
  0x37   :  { %820 = vset.pattern.permute.xlu0 %v924_v0  ;;  %822 = vset.pattern.permute.xlu1 %v925_v1  ;;  %v82_v3 = vld [vmem:[#allocation7 + $0x80] sm:$0xff]  ;;  %v83_v4 = vld [vmem:[#allocation7 + $0x88] sm:$0xff]  ;;  %v84_v8 = vld [vmem:[#allocation7 + $0x90] sm:$0xff]  ;;  %v926_v22 = vmov 1   ;;  %v927_v23 = vmov 3   ;;  %s929_s2 = smov [#allocation8]  }
  0x38   :  { %58 = vperm.xlu0 %820, %v55_v2   ;;  %283 = vperm.xlu1 %822, %v55_v2   ;;  %v681_v5 = vpack.c.bf16 %v83_v4, %v82_v3  ;;  %v66_v6 = vld [vmem:[#allocation7] sm:$0xff]  ;;  %v67_v7 = vld [vmem:[#allocation7 + $0x8] sm:$0xff]  ;;  %v85_v10 = vld [vmem:[#allocation7 + $0x98] sm:$0xff]  ;;  %s515_s21 = sshll.u32 %s929_s2, 4  ;;  %s516_s21 = int_to_ptr.vmem [resolvable:$true] %s515_s21 }
  0x39   :  { %v683_v9 = vpack.c.bf16 %v67_v7, %v66_v6  ;;  %v68_v11 = vld [vmem:[#allocation7 + $0x10] sm:$0xff]  ;;  %v69_v12 = vld [vmem:[#allocation7 + $0x18] sm:$0xff]  ;;  %v685_v13 = vpack.c.bf16 %v85_v10, %v84_v8  ;;  %v195_v14 = vld [vmem:[#allocation7 + $0x180] sm:$0xff]  ;;  %s891_s22 = scalar_lea.vmem %s516_s21, 64  ;;  %p896_p11 = scmp.lt.s32.totalorder %s516_s21, %s516_s21 }
  0x3a   :  { %682 = vmatprep.subr.bf16.mxu0 %v681_v5  ;;  %v196_v15 = vld [vmem:[#allocation7 + $0x188] sm:$0xff]  ;;  %v179_v16 = vld [vmem:[#allocation7 + $0x100] sm:$0xff]  ;;  %v687_v17 = vpack.c.bf16 %v69_v12, %v68_v11  ;;  %v197_v28 = vld [vmem:[#allocation7 + $0x190] sm:$0xff]  ;;  %p892_p10 = scmp.ne.s32.totalorder %s516_s21, %s891_s22  ;;  %p897_p12 = scmp.lt.s32.totalorder %s891_s22, %s891_s22 }
  0x3b   :  { %684 = vmatpush3.bf16.msra.mxu0 %v683_v9  ;;  %v713_v18 = vpack.c.bf16 %v196_v15, %v195_v14  ;;  %v180_v19 = vld [vmem:[#allocation7 + $0x108] sm:$0xff]  ;;  %v86_v20 = vld [vmem:[#allocation7 + $0xa0] sm:$0xff]  ;;  %v198_v29 = vld [vmem:[#allocation7 + $0x198] sm:$0xff] }
  0x3c   :  { %v87_v21 = vld [vmem:[#allocation7 + $0xa8] sm:$0xff]  ;;  %821 = vset.pattern.permute.xlu0 %v926_v22  ;;  %823 = vset.pattern.permute.xlu1 %v927_v23  ;;  %v715_v24 = vpack.c.bf16 %v180_v19, %v179_v16  ;;  %v70_v26 = vld [vmem:[#allocation7 + $0x20] sm:$0xff]  ;;  %v181_v30 = vld [vmem:[#allocation7 + $0x110] sm:$0xff]  ;;  %v717_v32 = vpack.c.bf16 %v198_v29, %v197_v28  ;;  %p898_p13 = por %p897_p12, %p896_p11 }
  0x3d   :  { %v689_v25 = vpack.c.bf16 %v87_v21, %v86_v20  ;;  %v71_v27 = vld [vmem:[#allocation7 + $0x28] sm:$0xff]  ;;  %170 = vperm.xlu0 %821, %v55_v2   ;;  %396 = vperm.xlu1 %823, %v55_v2   ;;  %v182_v31 = vld [vmem:[#allocation7 + $0x118] sm:$0xff]  ;;  %v88_v33 = vld [vmem:[#allocation7 + $0xb0] sm:$0xff] }
  0x3e   :  { %686 = vmatprep.subr.bf16.mxu0 %v685_v13  ;;  %714 = vmatprep.subr.bf16.mxu1 %v713_v18  ;;  %v89_v34 = vld [vmem:[#allocation7 + $0xb8] sm:$0xff]  ;;  %v691_v35 = vpack.c.bf16 %v71_v27, %v70_v26  ;;  %v719_v36 = vpack.c.bf16 %v182_v31, %v181_v30  ;;  %v72_v37 = vld [vmem:[#allocation7 + $0x30] sm:$0xff]  ;;  %v199_v38 = vld [vmem:[#allocation7 + $0x1a0] sm:$0xff]  ;;  %p899_p0 = pnand %p898_p13, %p892_p10 }
  0x3f   :  { %688 = vmatpush3.bf16.msra.mxu0 %v687_v17  ;;  %716 = vmatpush3.bf16.msra.mxu1 %v715_v24  ;;  %v200_v39 = vld [vmem:[#allocation7 + $0x1a8] sm:$0xff]  ;;  %v693_v40 = vpack.c.bf16 %v89_v34, %v88_v33  ;;  %v73_v41 = vld [vmem:[#allocation7 + $0x38] sm:$0xff]  ;;  %v183_v43 = vld [vmem:[#allocation7 + $0x120] sm:$0xff] }
  0x40   :  { %690 = vmatprep.subr.bf16.mxu0 %v689_v25  ;;  %718 = vmatprep.subr.bf16.mxu1 %v717_v32  ;;  %v721_v42 = vpack.c.bf16 %v200_v39, %v199_v38  ;;  %v184_v44 = vld [vmem:[#allocation7 + $0x128] sm:$0xff]  ;;  %v90_v45 = vld [vmem:[#allocation7 + $0xc0] sm:$0xff]  ;;  %v201_v47 = vld [vmem:[#allocation7 + $0x1b0] sm:$0xff]  ;;  %v695_v49 = vpack.c.bf16 %v73_v41, %v72_v37 }
  0x41   :  { %v91_v46 = vld [vmem:[#allocation7 + $0xc8] sm:$0xff]  ;;  %824 = vset.pattern.permute.xlu0 %v927_v23  ;;  %v202_v48 = vld [vmem:[#allocation7 + $0x1b8] sm:$0xff]  ;;  %v723_v50 = vpack.c.bf16 %v184_v44, %v183_v43  ;;  %v74_v51 = vld [vmem:[#allocation7 + $0x40] sm:$0xff]  ;;  %v52_v43 = vlaneseq }
  0x42   :  { %v75_v52 = vld [vmem:[#allocation7 + $0x48] sm:$0xff]  ;;  %v697_v53 = vpack.c.bf16 %v91_v46, %v90_v45  ;;  %v725_v54 = vpack.c.bf16 %v202_v48, %v201_v47  ;;  %v185_v55 = vld [vmem:[#allocation7 + $0x130] sm:$0xff]  ;;  %v186_v56 = vld [vmem:[#allocation7 + $0x138] sm:$0xff] }
  0x43   :  { %692 = vmatpush3.bf16.msra.mxu0 %v691_v35  ;;  %720 = vmatpush3.bf16.msra.mxu1 %v719_v36  ;;  %v92_v57 = vld [vmem:[#allocation7 + $0xd0] sm:$0xff]  ;;  %v93_v58 = vld [vmem:[#allocation7 + $0xd8] sm:$0xff]  ;;  %v203_v59 = vld [vmem:[#allocation7 + $0x1c0] sm:$0xff]  ;;  %v699_v61 = vpack.c.bf16 %v75_v52, %v74_v51  ;;  %v727_v62 = vpack.c.bf16 %v186_v56, %v185_v55  ;;  %v986_v44 = vand.u32 127, %v52_v43 }
  0x44   :  { %694 = vmatprep.subr.bf16.mxu0 %v693_v40  ;;  %722 = vmatprep.subr.bf16.mxu1 %v721_v42  ;;  %v204_v60 = vld [vmem:[#allocation7 + $0x1c8] sm:$0xff]  ;;  %v76_v63 = vld [vmem:[#allocation7 + $0x50] sm:$0xff]  ;;  %v77_v0 = vld [vmem:[#allocation7 + $0x58] sm:$0xff]  ;;  %v701_v1 = vpack.c.bf16 %v93_v58, %v92_v57  ;;  %v928_v57 = vmov 1.0  }
  0x45   :  { %v729_v2 = vpack.c.bf16 %v204_v60, %v203_v59  ;;  %v187_v3 = vld [vmem:[#allocation7 + $0x140] sm:$0xff]  ;;  %v188_v4 = vld [vmem:[#allocation7 + $0x148] sm:$0xff]  ;;  %v205_v7 = vld [vmem:[#allocation7 + $0x1d0] sm:$0xff]  ;;  %v703_v9 = vpack.c.bf16 %v77_v0, %v76_v63  ;;  %v54_v45 = vadd.s32 128, %v986_v44 }
  0x46   :  { %v94_v5 = vld [vmem:[#allocation7 + $0xe0] sm:$0xff]  ;;  %v95_v6 = vld [vmem:[#allocation7 + $0xe8] sm:$0xff]  ;;  %v206_v8 = vld [vmem:[#allocation7 + $0x1d8] sm:$0xff]  ;;  %v731_v10 = vpack.c.bf16 %v188_v4, %v187_v3 }
  0x47   :  { %696 = vmatpush3.bf16.msra.mxu0 %v695_v49  ;;  %724 = vmatpush3.bf16.msra.mxu1 %v723_v50  ;;  %v78_v11 = vld [vmem:[#allocation7 + $0x60] sm:$0xff]  ;;  %v79_v12 = vld [vmem:[#allocation7 + $0x68] sm:$0xff]  ;;  %v705_v13 = vpack.c.bf16 %v95_v6, %v94_v5  ;;  %v733_v14 = vpack.c.bf16 %v206_v8, %v205_v7  ;;  %v189_v15 = vld [vmem:[#allocation7 + $0x150] sm:$0xff] }
  0x48   :  { %698 = vmatprep.subr.bf16.mxu0 %v697_v53  ;;  %726 = vmatprep.subr.bf16.mxu1 %v725_v54  ;;  %v190_v16 = vld [vmem:[#allocation7 + $0x158] sm:$0xff]  ;;  %v96_v17 = vld [vmem:[#allocation7 + $0xf0] sm:$0xff]  ;;  %v207_v19 = vld [vmem:[#allocation7 + $0x1e0] sm:$0xff]  ;;  %v707_v21 = vpack.c.bf16 %v79_v12, %v78_v11 }
  0x49   :  { %v97_v18 = vld [vmem:[#allocation7 + $0xf8] sm:$0xff]  ;;  %v208_v20 = vld [vmem:[#allocation7 + $0x1e8] sm:$0xff]  ;;  %v735_v22 = vpack.c.bf16 %v190_v16, %v189_v15  ;;  %v80_v23 = vld [vmem:[#allocation7 + $0x70] sm:$0xff] }
  0x4a   :  { %v81_v24 = vld [vmem:[#allocation7 + $0x78] sm:$0xff]  ;;  %v709_v25 = vpack.c.bf16 %v97_v18, %v96_v17  ;;  %v737_v26 = vpack.c.bf16 %v208_v20, %v207_v19  ;;  %v191_v27 = vld [vmem:[#allocation7 + $0x160] sm:$0xff]  ;;  %v192_v28 = vld [vmem:[#allocation7 + $0x168] sm:$0xff] }
  0x4b   :  { %700 = vmatpush3.bf16.msra.mxu0 %v699_v61  ;;  %728 = vmatpush3.bf16.msra.mxu1 %v727_v62  ;;  %v308_v29 = vld [vmem:[#allocation7 + $0x280] sm:$0xff]  ;;  %v309_v30 = vld [vmem:[#allocation7 + $0x288] sm:$0xff]  ;;  %v209_v31 = vld [vmem:[#allocation7 + $0x1f0] sm:$0xff]  ;;  %v711_v33 = vpack.c.bf16 %v81_v24, %v80_v23  ;;  %v739_v34 = vpack.c.bf16 %v192_v28, %v191_v27 }
  0x4c   :  { %702 = vmatprep.subr.bf16.mxu0 %v701_v1  ;;  %730 = vmatprep.subr.bf16.mxu1 %v729_v2  ;;  %v210_v32 = vld [vmem:[#allocation7 + $0x1f8] sm:$0xff]  ;;  %v745_v35 = vpack.c.bf16 %v309_v30, %v308_v29  ;;  %v193_v37 = vld [vmem:[#allocation7 + $0x170] sm:$0xff]  ;;  %v421_v39 = vld [vmem:[#allocation7 + $0x380] sm:$0xff] }
  0x4d   :  { %v741_v36 = vpack.c.bf16 %v210_v32, %v209_v31  ;;  %v194_v38 = vld [vmem:[#allocation7 + $0x178] sm:$0xff]  ;;  %v422_v40 = vld [vmem:[#allocation7 + $0x388] sm:$0xff]  ;;  %v292_v46 = vld [vmem:[#allocation7 + $0x200] sm:$0xff] }
  0x4e   :  { %v743_v41 = vpack.c.bf16 %v194_v38, %v193_v37  ;;  %v777_v42 = vpack.c.bf16 %v422_v40, %v421_v39  ;;  %v293_v47 = vld [vmem:[#allocation7 + $0x208] sm:$0xff]  ;;  %v310_v48 = vld [vmem:[#allocation7 + $0x290] sm:$0xff]  ;;  %v311_v49 = vld [vmem:[#allocation7 + $0x298] sm:$0xff] }
  0x4f   :  { %704 = vmatpush3.bf16.msra.mxu0 %v703_v9  ;;  %732 = vmatpush3.bf16.msra.mxu1 %v731_v10  ;;  %v747_v51 = vpack.c.bf16 %v293_v47, %v292_v46  ;;  %v749_v53 = vpack.c.bf16 %v311_v49, %v310_v48  ;;  %v294_v54 = vld [vmem:[#allocation7 + $0x210] sm:$0xff]  ;;  %v295_v55 = vld [vmem:[#allocation7 + $0x218] sm:$0xff]  ;;  %v405_v56 = vld [vmem:[#allocation7 + $0x300] sm:$0xff] }
  0x50   :  { %706 = vmatprep.subr.bf16.mxu0 %v705_v13  ;;  %734 = vmatprep.subr.bf16.mxu1 %v733_v14  ;;  %v406_v58 = vld [vmem:[#allocation7 + $0x308] sm:$0xff]  ;;  %v312_v59 = vld [vmem:[#allocation7 + $0x2a0] sm:$0xff]  ;;  %v423_v61 = vld [vmem:[#allocation7 + $0x390] sm:$0xff]  ;;  %v751_v63 = vpack.c.bf16 %v295_v55, %v294_v54 }
  0x51   :  { %v313_v60 = vld [vmem:[#allocation7 + $0x2a8] sm:$0xff]  ;;  %v424_v62 = vld [vmem:[#allocation7 + $0x398] sm:$0xff]  ;;  %v779_v1 = vpack.c.bf16 %v406_v58, %v405_v56  ;;  %v296_v3 = vld [vmem:[#allocation7 + $0x220] sm:$0xff] }
  0x52   :  { %v753_v2 = vpack.c.bf16 %v313_v60, %v312_v59  ;;  %v297_v4 = vld [vmem:[#allocation7 + $0x228] sm:$0xff]  ;;  %v407_v5 = vld [vmem:[#allocation7 + $0x310] sm:$0xff]  ;;  %v781_v7 = vpack.c.bf16 %v424_v62, %v423_v61  ;;  %v408_v8 = vld [vmem:[#allocation7 + $0x318] sm:$0xff] }
  0x53   :  { %708 = vmatpush3.bf16.msra.mxu0 %v707_v21  ;;  %736 = vmatpush3.bf16.msra.mxu1 %v735_v22  ;;  %v314_v9 = vld [vmem:[#allocation7 + $0x2b0] sm:$0xff]  ;;  %v315_v10 = vld [vmem:[#allocation7 + $0x2b8] sm:$0xff]  ;;  %v425_v11 = vld [vmem:[#allocation7 + $0x3a0] sm:$0xff]  ;;  %v755_v13 = vpack.c.bf16 %v297_v4, %v296_v3  ;;  %v783_v14 = vpack.c.bf16 %v408_v8, %v407_v5 }
  0x54   :  { %710 = vmatprep.subr.bf16.mxu0 %v709_v25  ;;  %738 = vmatprep.subr.bf16.mxu1 %v737_v26  ;;  %v426_v12 = vld [vmem:[#allocation7 + $0x3a8] sm:$0xff]  ;;  %v757_v15 = vpack.c.bf16 %v315_v10, %v314_v9  ;;  %v298_v16 = vld [vmem:[#allocation7 + $0x230] sm:$0xff]  ;;  %v299_v17 = vld [vmem:[#allocation7 + $0x238] sm:$0xff] }
  0x55   :  { %v409_v18 = vld [vmem:[#allocation7 + $0x320] sm:$0xff]  ;;  %v785_v19 = vpack.c.bf16 %v426_v12, %v425_v11  ;;  %v410_v20 = vld [vmem:[#allocation7 + $0x328] sm:$0xff]  ;;  %v427_v23 = vld [vmem:[#allocation7 + $0x3b0] sm:$0xff]  ;;  %v759_v25 = vpack.c.bf16 %v299_v17, %v298_v16 }
  0x56   :  { %v316_v21 = vld [vmem:[#allocation7 + $0x2c0] sm:$0xff]  ;;  %v317_v22 = vld [vmem:[#allocation7 + $0x2c8] sm:$0xff]  ;;  %v428_v24 = vld [vmem:[#allocation7 + $0x3b8] sm:$0xff]  ;;  %v787_v26 = vpack.c.bf16 %v410_v20, %v409_v18 }
  0x57   :  { %712 = vmatpush3.bf16.msra.mxu0 %v711_v33  ;;  %740 = vmatpush3.bf16.msra.mxu1 %v739_v34  ;;  %v761_v27 = vpack.c.bf16 %v317_v22, %v316_v21  ;;  %v300_v28 = vld [vmem:[#allocation7 + $0x240] sm:$0xff]  ;;  %v301_v29 = vld [vmem:[#allocation7 + $0x248] sm:$0xff]  ;;  %v411_v30 = vld [vmem:[#allocation7 + $0x330] sm:$0xff]  ;;  %v789_v31 = vpack.c.bf16 %v428_v24, %v427_v23 }
  0x58   :  { %746 = vmatprep.subr.bf16.mxu0 %v745_v35  ;;  %742 = vmatprep.subr.bf16.mxu1 %v741_v36  ;;  %v412_v32 = vld [vmem:[#allocation7 + $0x338] sm:$0xff]  ;;  %v318_v33 = vld [vmem:[#allocation7 + $0x2d0] sm:$0xff]  ;;  %v429_v35 = vld [vmem:[#allocation7 + $0x3c0] sm:$0xff]  ;;  %v763_v37 = vpack.c.bf16 %v301_v29, %v300_v28 }
  0x59   :  { %v319_v34 = vld [vmem:[#allocation7 + $0x2d8] sm:$0xff]  ;;  %v430_v36 = vld [vmem:[#allocation7 + $0x3c8] sm:$0xff]  ;;  %v791_v38 = vpack.c.bf16 %v412_v32, %v411_v30  ;;  %v302_v40 = vld [vmem:[#allocation7 + $0x250] sm:$0xff] }
  0x5a   :  { %v765_v39 = vpack.c.bf16 %v319_v34, %v318_v33  ;;  %v793_v43 = vpack.c.bf16 %v430_v36, %v429_v35  ;;  %v320_v46 = vld [vmem:[#allocation7 + $0x2e0] sm:$0xff]  ;;  %v321_v47 = vld [vmem:[#allocation7 + $0x2e8] sm:$0xff]  ;;  %v431_v48 = vld [vmem:[#allocation7 + $0x3d0] sm:$0xff] }
  0x5b   :  { %744 = vmatpush3.bf16.msra.mxu1 %v743_v41  ;;  %v303_v41 = vld [vmem:[#allocation7 + $0x258] sm:$0xff]  ;;  %v304_v54 = vld [vmem:[#allocation7 + $0x260] sm:$0xff]  ;;  %v305_v55 = vld [vmem:[#allocation7 + $0x268] sm:$0xff] }
  0x5c   :  { %778 = vmatprep.subr.bf16.mxu1 %v777_v42  ;;  %v413_v42 = vld [vmem:[#allocation7 + $0x340] sm:$0xff]  ;;  %v432_v49 = vld [vmem:[#allocation7 + $0x3d8] sm:$0xff]  ;;  %v415_v56 = vld [vmem:[#allocation7 + $0x350] sm:$0xff] }
  0x5d   :  { %v797_v58 = vpack.c.bf16 %v432_v49, %v431_v48  ;;  %v416_v59 = vld [vmem:[#allocation7 + $0x358] sm:$0xff]  ;;  %v322_v60 = vld [vmem:[#allocation7 + $0x2f0] sm:$0xff]  ;;  %v433_v62 = vld [vmem:[#allocation7 + $0x3e0] sm:$0xff] }
  0x5e   :  { %v323_v61 = vld [vmem:[#allocation7 + $0x2f8] sm:$0xff]  ;;  %v306_v3 = vld [vmem:[#allocation7 + $0x270] sm:$0xff]  ;;  %v418_v8 = vld [vmem:[#allocation7 + $0x368] sm:$0xff] }
  0x5f   :  { %v307_v4 = vld [vmem:[#allocation7 + $0x278] sm:$0xff]  ;;  %v435_v9 = vld [vmem:[#allocation7 + $0x3f0] sm:$0xff] }
  0x60   :  { %v436_v10 = vld [vmem:[#allocation7 + $0x3f8] sm:$0xff]  ;;  %v775_v11 = vpack.c.bf16 %v307_v4, %v306_v3 }
  0x61   :  { %v56_v20 = vld [vmem:[#allocation5] sm:$0xf] }
  0xb7   :  { %v59_v50 = vpop.permute.xlu0 %58  ;;  %v989_v52 = vpop.permute.xlu1 %283 }
  0xb8   :  { %vm60_vm0 = vcmp.eq.s32.totalorder %v59_v50, %v986_v44  ;;  %vm61_vm1 = vcmp.eq.s32.totalorder %v59_v50, %v54_v45  ;;  %vm286_vm2 = vcmp.eq.s32.totalorder %v989_v52, %v54_v45  ;;  %v767_v50 = vpack.c.bf16 %v303_v41, %v302_v40 }
  0xb9   :  { %527 = vmatprep.mubr.msk.f32.mxu0 %vm61_vm1, %v928_v57  ;;  %vm285_vm6 = vcmp.eq.s32.totalorder %v989_v52, %v986_v44 }
  0xba   :  { %528 = vmatmul.mubr.msk.f32.vlgmr.msra.gmra.mrb[0].mxu0 %vm60_vm0, %v928_v57 }
  0xbb   :  { %748 = vmatpush3.bf16.msra.mxu0 %v747_v51  ;;  %535 = vmatprep.mubr.msk.f32.mxu0 %vm286_vm2, %v928_v57 }
  0xbc   :  { %v171_v0 = vpop.permute.xlu0 %170  ;;  %750 = vmatprep.subr.bf16.mxu0 %v749_v53  ;;  %v996_v6 = vpop.permute.xlu1 %396  ;;  %v769_v53 = vpack.c.bf16 %v321_v47, %v320_v46 }
  0xbd   :  { %vm172_vm3 = vcmp.eq.s32.totalorder %v171_v0, %v986_v44  ;;  %vm173_vm4 = vcmp.eq.s32.totalorder %v171_v0, %v54_v45  ;;  %vm399_vm5 = vcmp.eq.s32.totalorder %v996_v6, %v54_v45  ;;  %v414_v45 = vld [vmem:[#allocation7 + $0x348] sm:$0xff]  ;;  %v771_v0 = vpack.c.bf16 %v305_v55, %v304_v54 }
  0xbe   :  { %531 = vmatprep.mubr.msk.f32.mxu1 %vm173_vm4, %v928_v57  ;;  %v795_v51 = vpack.c.bf16 %v414_v45, %v413_v42  ;;  %vm398_vm7 = vcmp.eq.s32.totalorder %v996_v6, %v986_v44 }
  0xbf   :  { %752 = vmatpush3.bf16.msra.mxu0 %v751_v63  ;;  %532 = vmatmul.mubr.msk.f32.vlgmr.msra.gmra.mrb[0].mxu1 %vm172_vm3, %v928_v57  ;;  %v434_v63 = vld [vmem:[#allocation7 + $0x3e8] sm:$0xff] }
  0xc0   :  { %780 = vmatpush3.bf16.msra.mxu1 %v779_v1  ;;  %754 = vmatprep.subr.bf16.mxu0 %v753_v2  ;;  %v799_v1 = vpack.c.bf16 %v416_v59, %v415_v56  ;;  %v773_v2 = vpack.c.bf16 %v323_v61, %v322_v60  ;;  %v801_v5 = vpack.c.bf16 %v434_v63, %v433_v62 }
  0xc1   :  { %782 = vmatprep.subr.bf16.mxu1 %v781_v7  ;;  %539 = vmatprep.mubr.msk.f32.mxu1 %vm399_vm5, %v928_v57  ;;  %v417_v7 = vld [vmem:[#allocation7 + $0x360] sm:$0xff] }
  0xc2   :  { %v803_v12 = vpack.c.bf16 %v418_v8, %v417_v7 }
  0xc3   :  { %756 = vmatpush3.bf16.msra.mxu0 %v755_v13  ;;  %v805_v13 = vpack.c.bf16 %v436_v10, %v435_v9 }
  0xc4   :  { %784 = vmatpush3.bf16.msra.mxu1 %v783_v14  ;;  %758 = vmatprep.subr.bf16.mxu0 %v757_v15  ;;  %v419_v14 = vld [vmem:[#allocation7 + $0x370] sm:$0xff]  ;;  %v420_v15 = vld [vmem:[#allocation7 + $0x378] sm:$0xff] }
  0xc5   :  { %786 = vmatprep.subr.bf16.mxu1 %v785_v19  ;;  %v807_v16 = vpack.c.bf16 %v420_v15, %v419_v14 }
  0xc7   :  { %760 = vmatpush3.bf16.msra.mxu0 %v759_v25 }
  0xc8   :  { %788 = vmatpush3.bf16.msra.mxu1 %v787_v26  ;;  %762 = vmatprep.subr.bf16.mxu0 %v761_v27 }
  0xc9   :  { %790 = vmatprep.subr.bf16.mxu1 %v789_v31 }
  0xcb   :  { %764 = vmatpush3.bf16.msra.mxu0 %v763_v37 }
  0xcc   :  { %792 = vmatpush3.bf16.msra.mxu1 %v791_v38  ;;  %766 = vmatprep.subr.bf16.mxu0 %v765_v39 }
  0xcd   :  { %794 = vmatprep.subr.bf16.mxu1 %v793_v43 }
  0xcf   :  { %768 = vmatpush3.bf16.msra.mxu0 %v767_v50 }
  0xd0   :  { %796 = vmatpush3.bf16.msra.mxu1 %v795_v51  ;;  %770 = vmatprep.subr.bf16.mxu0 %v769_v53 }
  0xd1   :  { %798 = vmatprep.subr.bf16.mxu1 %v797_v58 }
  0xd3   :  { %772 = vmatpush3.bf16.msra.mxu0 %v771_v0 }
  0xd4   :  { %800 = vmatpush3.bf16.msra.mxu1 %v799_v1  ;;  %774 = vmatprep.subr.bf16.mxu0 %v773_v2 }
  0xd5   :  { %802 = vmatprep.subr.bf16.mxu1 %v801_v5 }
  0xd7   :  { %776 = vmatpush3.bf16.msra.mxu0 %v775_v11 }
  0xd8   :  { %804 = vmatpush3.bf16.msra.mxu1 %v803_v12 }
  0xd9   :  { %806 = vmatprep.subr.bf16.mxu1 %v805_v13 }
  0xda   :  { %536 = vmatmul.mubr.msk.f32.vlgmr.msra.gmra.mrb[2].mxu0 %vm285_vm6, %v928_v57 }
  0xdc   :  { %808 = vmatpush3.bf16.msra.mxu1 %v807_v16 }
  0xdf   :  { %540 = vmatmul.mubr.msk.f32.vlgmr.msra.gmra.mrb[2].mxu1 %vm398_vm7, %v928_v57 }
 0x18d   :  { %v573_v17 = vpop.f32.mrb[0].mxu0 }
 0x18e   :  { %v574_v18 = vpop.f32.mrb[1].mxu0 }
 0x18f   :  { %v575_v19 = vadd.f32 %v574_v18, %v573_v17 }
 0x191   :  { %v168_v23 = vadd.f32 %v575_v19, %v56_v20 }
 0x192   :  { %v608_v21 = vpop.f32.mrb[0].mxu1 }
 0x193   :  { %v609_v22 = vpop.f32.mrb[1].mxu1 }
 0x194   :  { %v610_v52 = vadd.f32 %v609_v22, %v608_v21 }
 0x196   :  { %v281_v24 = vadd.f32 %v610_v52, %v168_v23 }
 0x1ad   :  { %v643_v25 = vpop.f32.mrb[2].mxu0 }
 0x1ae   :  { %v644_v26 = vpop.f32.mrb[3].mxu0 }
 0x1af   :  { %v645_v27 = vadd.f32 %v644_v26, %v643_v25 }
 0x1b1   :  { %v394_v28 = vadd.f32 %v645_v27, %v281_v24 }
 0x1b2   :  { %v678_v29 = vpop.f32.mrb[2].mxu1 }
 0x1b3   :  { %v679_v30 = vpop.f32.mrb[3].mxu1 }
 0x1b4   :  { %v680_v44 = vadd.f32 %v679_v30, %v678_v29 }
 0x1b6   :  { %v507_v6 = vadd.f32 %v680_v44, %v394_v28 }
 0x1b8   :  { %508 = vst [vmem:[#allocation8] sm:$0xf] %v507_v6 }
 0x1b9   :  { %902 = shalt.err (!%p899_p0)
}
 0x1ba   :  { %s903_s25 = scalar_lea.hbm %s1026_s3, 64 }
 0x1bb   :  { %p904_p1 = scmp.ne.s32.totalorder %s1026_s3, %s903_s25  ;;  %p907_p2 = scmp.lt.u32.totalorder %s903_s25, %s1026_s3 }
 0x1bd   :  { %p909_p3 = pnand %p907_p2, %p904_p1 }
 0x1bf   :  { %912 = shalt.err (!%p909_p3)
}
 0x1c0   :  { %518 = dma.vmem_to_hbm [thread:$0]  %s516_s21, 64, %s1026_s3, [#allocation4]  }
 0x1c1   :  { %917 = dma.done.wait [#allocation4], 64  }
 0x1c2   :  { %918 = vsyncadd [#allocation4], 4294967232 }
 0x1c3   :  { %522 = vsyncpa [#allocation3], 1 }
 0x1c4   :  { %523 = vsyncpa [#allocation6], 1 }
 0x1c5   :  { %524 = vsyncpa [#allocation4], 1 }

</bundles_post_ra>
